<compile_context>
chip_gen: v7x
topology: tpu7x:2x2x1
jax: 0.10.0
libtpu: 0.0.40
codegen_flags: <defaults>
</compile_context>

<pallas_src>
import jax
import jax.numpy as jnp
import numpy as np
from jax import lax
from jax.experimental import pallas as pl
from jax.experimental.pallas import tpu as pltpu


def _round_up(v, m):
    return ((v + m - 1) // m) * m


def _ffn_kernel(x_ref, w1_ref, b1_ref, w2_ref, b2_ref, g_ref, bta_ref, o_ref, acc_ref):
    # Grid: (row_tiles [parallel], h_tiles [arbitrary/reduction]).
    # x_ref:  (tm, D)      token-row tile (invariant across h axis)
    # w1_ref: (D, th)      W1 column chunk (streamed over h)
    # b1_ref: (1, th)      b1 chunk
    # w2_ref: (th, D)      W2 row chunk
    # b2_ref/g_ref/bta_ref: (1, D)  invariant, single-buffered
    # o_ref:  (tm, D)
    # acc_ref:(tm, D) f32  partial FFN output accumulator
    h_idx = pl.program_id(1)

    @pl.when(h_idx == 0)
    def _():
        acc_ref[...] = jnp.zeros_like(acc_ref)

    x = x_ref[...]  # native dtype (bf16 in real models) -> full-rate MXU

    # First GEMM: (tm, D) @ (D, th) with f32 accumulation; bias + ReLU in f32,
    # then cast back down to the native dtype for the second GEMM.
    pre = jnp.dot(x, w1_ref[...], preferred_element_type=jnp.float32)
    pre = pre + b1_ref[...].astype(jnp.float32)
    h = jnp.maximum(pre, 0.0).astype(x.dtype)

    # Second GEMM chunk: (tm, th) @ (th, D), accumulate in f32 scratch.
    acc_ref[...] += jnp.dot(h, w2_ref[...], preferred_element_type=jnp.float32)

    @pl.when(h_idx == pl.num_programs(1) - 1)
    def _():
        # Residual + b2, then LayerNorm (f32 epilogue).
        y = acc_ref[...] + x.astype(jnp.float32) + b2_ref[...].astype(jnp.float32)
        inv_d = jnp.float32(1.0 / y.shape[-1])
        s1 = jnp.sum(y, axis=-1, keepdims=True)
        s2 = jnp.sum(y * y, axis=-1, keepdims=True)
        mean = s1 * inv_d
        var = jnp.maximum(s2 * inv_d - mean * mean, 0.0)  # one-pass, clamped
        yhat = (y - mean) * lax.rsqrt(var + 1e-6)
        o_ref[...] = (
            yhat * g_ref[...].astype(jnp.float32) + bta_ref[...].astype(jnp.float32)
        ).astype(o_ref.dtype)


def poss_feed_forward(x, w1, b1, w2, b2, gamma, beta, *, tm=256, th=512):
    """x: (B, S, D); w1: (D, H); b1: (H,); w2: (H, D); b2: (D,); gamma/beta: (D,)."""
    B, S, D = x.shape
    H = w1.shape[1]
    assert w1.shape == (D, H) and w2.shape == (H, D)
    assert b1.shape == (H,) and b2.shape == (D,)
    assert gamma.shape == (D,) and beta.shape == (D,)

    N = B * S
    xf = x.reshape(N, D)  # tokens on sublanes, D on lanes

    # --- Row tiling: pad N up to a multiple of tm (never the tm=N fallback). ---
    # Shrink tm for small N so the "parallel" axis still has >= 2 steps (megacore).
    tm = max(8, min(int(tm), _round_up(-(-N // 2), 8)))
    tm = _round_up(tm, 8)
    N_pad = _round_up(N, tm)
    if N_pad != N:
        xf = jnp.pad(xf, ((0, N_pad - N), (0, 0)))

    # --- Hidden (H) tiling: chunk W1 columns / W2 rows, pad H with zeros. ---
    if H <= th:
        th_eff, H_pad = H, H
    else:
        th_eff = _round_up(min(int(th), H), 128)
        H_pad = _round_up(H, th_eff)
    w1p = w1 if H_pad == H else jnp.pad(w1, ((0, 0), (0, H_pad - H)))
    w2p = w2 if H_pad == H else jnp.pad(w2, ((0, H_pad - H), (0, 0)))
    b1p = (b1 if H_pad == H else jnp.pad(b1, (0, H_pad - H))).reshape(1, H_pad)

    b2_2d = b2.reshape(1, D)
    g_2d = gamma.reshape(1, D)
    bta_2d = beta.reshape(1, D)

    grid = (N_pad // tm, H_pad // th_eff)

    # Explicit VMEM budget from the actual working set (+50% headroom),
    # capped at ~100 MiB (v5e/v6e); defaults stay well under v7x's 64 MiB.
    bx = xf.dtype.itemsize
    bw = w1p.dtype.itemsize
    est = (
        4 * tm * D * bx                                   # x + out, double-buffered
        + 2 * (D * th_eff + th_eff * D + th_eff) * bw     # W1/W2/b1 chunks, double-buffered
        + tm * D * 4                                      # f32 accumulator
        + 6 * D * bw                                      # b2 / gamma / beta (single-buffered)
    )
    vmem_limit = int(min(100 * 2**20, max(32 * 2**20, int(est * 1.5))))

    out = pl.pallas_call(
        _ffn_kernel,
        out_shape=jax.ShapeDtypeStruct((N_pad, D), x.dtype),
        grid=grid,
        in_specs=[
            pl.BlockSpec((tm, D), lambda i, h: (i, 0)),        # x tile (invariant in h)
            pl.BlockSpec((D, th_eff), lambda i, h: (0, h)),    # W1 chunk (streamed)
            pl.BlockSpec((1, th_eff), lambda i, h: (0, h)),    # b1 chunk
            pl.BlockSpec((th_eff, D), lambda i, h: (h, 0)),    # W2 chunk (streamed)
            pl.BlockSpec((1, D), lambda i, h: (0, 0),
                         pipeline_mode=pl.Buffered(1)),        # b2 (invariant)
            pl.BlockSpec((1, D), lambda i, h: (0, 0),
                         pipeline_mode=pl.Buffered(1)),        # LN gamma (invariant)
            pl.BlockSpec((1, D), lambda i, h: (0, 0),
                         pipeline_mode=pl.Buffered(1)),        # LN beta (invariant)
        ],
        out_specs=pl.BlockSpec((tm, D), lambda i, h: (i, 0)),
        scratch_shapes=[pltpu.VMEM((tm, D), jnp.float32)],
        compiler_params=pltpu.CompilerParams(
            dimension_semantics=("parallel", "arbitrary"),
            vmem_limit_bytes=vmem_limit,
        ),
    )(xf, w1p, b1p, w2p, b2_2d, g_2d, bta_2d)

    return out[:N].reshape(B, S, D)


def _reference(x, w1, b1, w2, b2, gamma, beta):
    h = jnp.maximum(jnp.einsum("bsd,dh->bsh", x, w1) + b1, 0.0)
    y = jnp.einsum("bsh,hd->bsd", h, w2) + b2 + x
    mean = jnp.mean(y, axis=-1, keepdims=True)
    var = jnp.mean((y - mean) ** 2, axis=-1, keepdims=True)
    return (y - mean) / jnp.sqrt(var + 1e-6) * gamma + beta


if __name__ == "__main__":
    # Small shapes consistent with the module's forward: (B, S, d_model).
    # d_model=128 keeps stores lane-dense; d_hidden=256 with th=128 exercises
    # the H-chunked reduction axis (2 steps).
    B, S = 2, 8
    d_model, d_hidden = 128, 256

    key = jax.random.PRNGKey(0)
    kx, kw1, kb1, kw2, kb2, kg, kbt = jax.random.split(key, 7)

    x = jax.random.normal(kx, (B, S, d_model), dtype=jnp.float32)
    w1 = jax.random.normal(kw1, (d_model, d_hidden), dtype=jnp.float32) * 0.1
    b1 = jax.random.normal(kb1, (d_hidden,), dtype=jnp.float32) * 0.1
    w2 = jax.random.normal(kw2, (d_hidden, d_model), dtype=jnp.float32) * 0.1
    b2 = jax.random.normal(kb2, (d_model,), dtype=jnp.float32) * 0.1
    gamma = 1.0 + 0.1 * jax.random.normal(kg, (d_model,), dtype=jnp.float32)
    beta = 0.1 * jax.random.normal(kbt, (d_model,), dtype=jnp.float32)

    # Loose-ish tolerance: matmul operands stay in native dtype on the MXU
    # (bf16-pass rounding possible), per the performance feedback.
    TOL = 2e-2

    # Case 1: tm=8 -> 2 row tiles, th=128 -> 2 hidden chunks (no padding needed).
    out = poss_feed_forward(x, w1, b1, w2, b2, gamma, beta, tm=8, th=128)
    out = jax.block_until_ready(out)
    ref = _reference(x, w1, b1, w2, b2, gamma, beta)
    assert out.shape == (B, S, d_model)
    np.testing.assert_allclose(np.asarray(out), np.asarray(ref), rtol=TOL, atol=TOL)

    # Case 2: ragged token count (N=10) -> exercises row padding instead of tm=N.
    x2 = x[:, :5, :]
    out2 = poss_feed_forward(x2, w1, b1, w2, b2, gamma, beta)  # default tm/th
    out2 = jax.block_until_ready(out2)
    ref2 = _reference(x2, w1, b1, w2, b2, gamma, beta)
    assert out2.shape == x2.shape
    np.testing.assert_allclose(np.asarray(out2), np.asarray(ref2), rtol=TOL, atol=TOL)

    print("KERNEL_OK")
</pallas_src>

<mosaic_0001>
module attributes {stable_mosaic.version = 11 : i64} {
  func.func @_ffn_kernel(%arg0: i32, %arg1: i32, %arg2: memref<8x128xf32, #tpu.memory_space<vmem>>, %arg3: memref<128x128xf32, #tpu.memory_space<vmem>>, %arg4: memref<1x128xf32, #tpu.memory_space<vmem>>, %arg5: memref<128x128xf32, #tpu.memory_space<vmem>>, %arg6: memref<1x128xf32, #tpu.memory_space<vmem>>, %arg7: memref<1x128xf32, #tpu.memory_space<vmem>>, %arg8: memref<1x128xf32, #tpu.memory_space<vmem>>, %arg9: memref<8x128xf32, #tpu.memory_space<vmem>>, %arg10: memref<8x128xf32, #tpu.memory_space<vmem>>) attributes {dimension_semantics = [#tpu.dimension_semantics<parallel>, #tpu.dimension_semantics<arbitrary>], iteration_bounds = array<i64: 2, 2>, scalar_prefetch = 0 : i64, scratch_operands = 1 : i64, tpu.core_type = #tpu.core_type<tc>, window_params = [{transform_indices = @transform_0, window_bounds = array<i64: 8, 128>}, {transform_indices = @transform_1, window_bounds = array<i64: 128, 128>}, {transform_indices = @transform_2, window_bounds = array<i64: 1, 128>}, {transform_indices = @transform_3, window_bounds = array<i64: 128, 128>}, {pipeline_mode = #tpu.pipeline_mode<synchronous>, transform_indices = @transform_4, window_bounds = array<i64: 1, 128>}, {pipeline_mode = #tpu.pipeline_mode<synchronous>, transform_indices = @transform_5, window_bounds = array<i64: 1, 128>}, {pipeline_mode = #tpu.pipeline_mode<synchronous>, transform_indices = @transform_6, window_bounds = array<i64: 1, 128>}, {transform_indices = @transform_7, window_bounds = array<i64: 8, 128>}]} {
    %c0_i32 = arith.constant 0 : i32
    %0 = arith.cmpi eq, %arg1, %c0_i32 : i32
    %1 = arith.extui %0 : i1 to i32
    %c0_i32_0 = arith.constant 0 : i32
    %2 = arith.cmpi ne, %1, %c0_i32_0 : i32
    scf.if %2 {
      %cst_15 = arith.constant 0.000000e+00 : f32
      %19 = vector.broadcast %cst_15 : f32 to vector<8x128xf32>
      %c0_16 = arith.constant 0 : index
      %c0_17 = arith.constant 0 : index
      %20 = vector.load %arg10[%c0_16, %c0_17] : memref<8x128xf32, #tpu.memory_space<vmem>>, vector<8x128xf32>
      tpu.vector_store %arg10[%c0_16, %c0_17], %19 {strides = array<i32>} : memref<8x128xf32, #tpu.memory_space<vmem>>, vector<8x128xf32>,
    } else {
    }
    %c0 = arith.constant 0 : index
    %c0_1 = arith.constant 0 : index
    %3 = vector.load %arg2[%c0, %c0_1] : memref<8x128xf32, #tpu.memory_space<vmem>>, vector<8x128xf32>
    %c0_2 = arith.constant 0 : index
    %c0_3 = arith.constant 0 : index
    %4 = vector.load %arg3[%c0_2, %c0_3] : memref<128x128xf32, #tpu.memory_space<vmem>>, vector<128x128xf32>
    %cst = arith.constant dense<0.000000e+00> : vector<8x128xf32>
    %5 = tpu.matmul %3, %4, %cst {dimension_numbers = #tpu.dot_dimension_numbers<[1], [0], [0], [1], [0, 0, 1, 1], [], []>} : vector<8x128xf32>, vector<128x128xf32>, vector<8x128xf32> -> vector<8x128xf32>
    %c0_4 = arith.constant 0 : index
    %c0_5 = arith.constant 0 : index
    %6 = vector.load %arg4[%c0_4, %c0_5] : memref<1x128xf32, #tpu.memory_space<vmem>>, vector<1x128xf32>
    %7 = vector.broadcast %6 : vector<1x128xf32> to vector<8x128xf32>
    %8 = arith.addf %5, %7 : vector<8x128xf32>
    %cst_6 = arith.constant 0.000000e+00 : f32
    %9 = vector.broadcast %cst_6 : f32 to vector<8x128xf32>
    %10 = arith.maximumf %8, %9 : vector<8x128xf32>
    %c0_7 = arith.constant 0 : index
    %c0_8 = arith.constant 0 : index
    %11 = vector.load %arg10[%c0_7, %c0_8] : memref<8x128xf32, #tpu.memory_space<vmem>>, vector<8x128xf32>
    %c0_9 = arith.constant 0 : index
    %c0_10 = arith.constant 0 : index
    %12 = vector.load %arg5[%c0_9, %c0_10] : memref<128x128xf32, #tpu.memory_space<vmem>>, vector<128x128xf32>
    %cst_11 = arith.constant dense<0.000000e+00> : vector<8x128xf32>
    %13 = tpu.matmul %10, %12, %cst_11 {dimension_numbers = #tpu.dot_dimension_numbers<[1], [0], [0], [1], [0, 0, 1, 1], [], []>} : vector<8x128xf32>, vector<128x128xf32>, vector<8x128xf32> -> vector<8x128xf32>
    %14 = arith.addf %11, %13 : vector<8x128xf32>
    %c0_12 = arith.constant 0 : index
    %c0_13 = arith.constant 0 : index
    %15 = vector.load %arg10[%c0_12, %c0_13] : memref<8x128xf32, #tpu.memory_space<vmem>>, vector<8x128xf32>
    tpu.vector_store %arg10[%c0_12, %c0_13], %14 {strides = array<i32>} : memref<8x128xf32, #tpu.memory_space<vmem>>, vector<8x128xf32>,
    %c1_i32 = arith.constant 1 : i32
    %16 = arith.cmpi eq, %arg1, %c1_i32 : i32
    %17 = arith.extui %16 : i1 to i32
    %c0_i32_14 = arith.constant 0 : i32
    %18 = arith.cmpi ne, %17, %c0_i32_14 : i32
    scf.if %18 {
      %c0_15 = arith.constant 0 : index
      %c0_16 = arith.constant 0 : index
      %19 = vector.load %arg10[%c0_15, %c0_16] : memref<8x128xf32, #tpu.memory_space<vmem>>, vector<8x128xf32>
      %20 = arith.addf %19, %3 : vector<8x128xf32>
      %c0_17 = arith.constant 0 : index
      %c0_18 = arith.constant 0 : index
      %21 = vector.load %arg6[%c0_17, %c0_18] : memref<1x128xf32, #tpu.memory_space<vmem>>, vector<1x128xf32>
      %22 = vector.broadcast %21 : vector<1x128xf32> to vector<8x128xf32>
      %23 = arith.addf %20, %22 : vector<8x128xf32>
      %cst_19 = arith.constant dense<0.000000e+00> : vector<8xf32>
      %24 = vector.multi_reduction <add>, %23, %cst_19 [1] : vector<8x128xf32> to vector<8xf32>
      %25 = vector.shape_cast %24 : vector<8xf32> to vector<8x1xf32>
      %26 = arith.mulf %23, %23 : vector<8x128xf32>
      %cst_20 = arith.constant dense<0.000000e+00> : vector<8xf32>
      %27 = vector.multi_reduction <add>, %26, %cst_20 [1] : vector<8x128xf32> to vector<8xf32>
      %28 = vector.shape_cast %27 : vector<8xf32> to vector<8x1xf32>
      %cst_21 = arith.constant 7.812500e-03 : f32
      %29 = vector.broadcast %cst_21 : f32 to vector<8x1xf32>
      %30 = arith.mulf %25, %29 : vector<8x1xf32>
      %cst_22 = arith.constant 7.812500e-03 : f32
      %31 = vector.broadcast %cst_22 : f32 to vector<8x1xf32>
      %32 = arith.mulf %28, %31 : vector<8x1xf32>
      %33 = arith.mulf %30, %30 : vector<8x1xf32>
      %34 = arith.subf %32, %33 : vector<8x1xf32>
      %cst_23 = arith.constant 0.000000e+00 : f32
      %35 = vector.broadcast %cst_23 : f32 to vector<8x1xf32>
      %36 = arith.maximumf %34, %35 : vector<8x1xf32>
      %37 = vector.broadcast %30 : vector<8x1xf32> to vector<8x128xf32>
      %38 = arith.subf %23, %37 : vector<8x128xf32>
      %cst_24 = arith.constant 9.99999997E-7 : f32
      %39 = vector.broadcast %cst_24 : f32 to vector<8x1xf32>
      %40 = arith.addf %36, %39 : vector<8x1xf32>
      %41 = math.rsqrt %40 : vector<8x1xf32>
      %42 = vector.broadcast %41 : vector<8x1xf32> to vector<8x128xf32>
      %43 = arith.mulf %38, %42 : vector<8x128xf32>
      %c0_25 = arith.constant 0 : index
      %c0_26 = arith.constant 0 : index
      %44 = vector.load %arg7[%c0_25, %c0_26] : memref<1x128xf32, #tpu.memory_space<vmem>>, vector<1x128xf32>
      %45 = vector.broadcast %44 : vector<1x128xf32> to vector<8x128xf32>
      %46 = arith.mulf %43, %45 : vector<8x128xf32>
      %c0_27 = arith.constant 0 : index
      %c0_28 = arith.constant 0 : index
      %47 = vector.load %arg8[%c0_27, %c0_28] : memref<1x128xf32, #tpu.memory_space<vmem>>, vector<1x128xf32>
      %48 = vector.broadcast %47 : vector<1x128xf32> to vector<8x128xf32>
      %49 = arith.addf %46, %48 : vector<8x128xf32>
      %c0_29 = arith.constant 0 : index
      %c0_30 = arith.constant 0 : index
      %50 = vector.load %arg9[%c0_29, %c0_30] : memref<8x128xf32, #tpu.memory_space<vmem>>, vector<8x128xf32>
      tpu.vector_store %arg9[%c0_29, %c0_30], %49 {strides = array<i32>} : memref<8x128xf32, #tpu.memory_space<vmem>>, vector<8x128xf32>,
    } else {
    }
    return
  }
  func.func @transform_0(%arg0: i32, %arg1: i32) -> (i32, i32) {
    %c0_i32 = arith.constant 0 : i32
    %c0_i32_0 = arith.constant 0 : i32
    return %arg0, %c0_i32 : i32, i32
  }
  func.func @transform_1(%arg0: i32, %arg1: i32) -> (i32, i32) {
    %c0_i32 = arith.constant 0 : i32
    %c0_i32_0 = arith.constant 0 : i32
    return %c0_i32, %arg1 : i32, i32
  }
  func.func @transform_2(%arg0: i32, %arg1: i32) -> (i32, i32) {
    %c0_i32 = arith.constant 0 : i32
    %c0_i32_0 = arith.constant 0 : i32
    return %c0_i32, %arg1 : i32, i32
  }
  func.func @transform_3(%arg0: i32, %arg1: i32) -> (i32, i32) {
    %c0_i32 = arith.constant 0 : i32
    %c0_i32_0 = arith.constant 0 : i32
    return %arg1, %c0_i32 : i32, i32
  }
  func.func @transform_4(%arg0: i32, %arg1: i32) -> (i32, i32) {
    %c0_i32 = arith.constant 0 : i32
    %c0_i32_0 = arith.constant 0 : i32
    %c0_i32_1 = arith.constant 0 : i32
    return %c0_i32, %c0_i32_0 : i32, i32
  }
  func.func @transform_5(%arg0: i32, %arg1: i32) -> (i32, i32) {
    %c0_i32 = arith.constant 0 : i32
    %c0_i32_0 = arith.constant 0 : i32
    %c0_i32_1 = arith.constant 0 : i32
    return %c0_i32, %c0_i32_0 : i32, i32
  }
  func.func @transform_6(%arg0: i32, %arg1: i32) -> (i32, i32) {
    %c0_i32 = arith.constant 0 : i32
    %c0_i32_0 = arith.constant 0 : i32
    %c0_i32_1 = arith.constant 0 : i32
    return %c0_i32, %c0_i32_0 : i32, i32
  }
  func.func @transform_7(%arg0: i32, %arg1: i32) -> (i32, i32) {
    %c0_i32 = arith.constant 0 : i32
    %c0_i32_0 = arith.constant 0 : i32
    return %arg0, %c0_i32 : i32, i32
  }
}

</mosaic_0001>

<bundles_post_ra>
// kernel: tpu_custom_call.1
= control target key start
LH: loop header
LB: loop body
LE: loop exit
PB: predicated region body
PF: predicated region fallthrough
CT: control target
= control target key end

     0   :  { %s1769_s0 = inlined_call_operand.hbm [shape: f32[16,128], index: 0, kind: input, shape index: {}]   ;;  %s1770_s1 = inlined_call_operand.hbm [shape: f32[128,256], index: 1, kind: input, shape index: {}]   ;;  %s1771_s2 = inlined_call_operand.vmem [shape: f32[1,256], index: 2, kind: input, shape index: {}]   ;;  %s1772_s3 = inlined_call_operand.hbm [shape: f32[256,128], index: 3, kind: input, shape index: {}]   ;;  %s1773_s4 = inlined_call_operand.vmem [shape: f32[1,128], index: 4, kind: input, shape index: {}]   ;;  %s1774_s5 = inlined_call_operand.vmem [shape: f32[1,128], index: 5, kind: input, shape index: {}]   ;;  %s1775_s6 = inlined_call_operand.vmem [shape: f32[1,128], index: 6, kind: input, shape index: {}]   ;;  %s1776_s7 = inlined_call_operand.hbm [shape: f32[16,128], index: 7, kind: output, shape index: {}]  }
   0x1   :  { %1789 = sst [smem:[#allocation20_spill]] %s1770_s1 }
   0x2   :  { %1790 = sst [smem:[#allocation21_spill]] %s1771_s2 }
   0x3   :  { %1791 = sst [smem:[#allocation22_spill]] %s1773_s4 }
   0x4   :  { %1792 = sst [smem:[#allocation23_spill]] %s1774_s5 }
   0x5   :  { %1793 = sst [smem:[#allocation24_spill]] %s1775_s6 }
   0x6   :  { %1794 = sst [smem:[#allocation25_spill]] %s1776_s7 }
   0x7   :  { %12 = vsyncpa [#allocation4], 0 }
   0x8   :  { %14 = vsyncpa [#allocation4 + $0x1], 0 }
   0x9   :  { %15 = vsyncpa [#allocation7], 0 }
   0xa   :  { %17 = vsyncpa [#allocation7 + $0x1], 0 }
   0xb   :  { %18 = vsyncpa [#allocation5], 0 }
   0xc   :  { %20 = vsyncpa [#allocation5 + $0x1], 0  ;;  %s1347_s24 = smov 0   ;;  %s1349_s25 = smov 0  }
   0xd   :  { %s1351_s26 = smov 0   ;;  %s1353_s27 = smov 0  }
   0xe   :  { %s1355_s28 = smov 0   ;;  %s1357_s29 = smov 0  }
   0xf   :  { %s1359_s30 = smov 0   ;;  %s1361_s8 = smov 0  }
  0x10   :  { %s1363_s9 = smov 0   ;;  %s1365_s10 = smov 0  }
  0x11   :  { %s1367_s11 = smov 0  }
  0x12 LB: > { %1795 = sst [smem:[#allocation13_spill]] %s1274_s29  ;;  %p53_p0 = scmp.eq.s32.totalorder %s1294_s11, 0  ;;  %s1294_s11 = sphi %s1367_s11, %s26_s11   ;;  %s1290_s10 = sphi %s1365_s10, %s1834_s10   ;;  %s1286_s9 = sphi %s1363_s9, %s1841_s9   ;;  %s1282_s8 = sphi %s1361_s8, %s1832_s8   ;;  %s1278_s30 = sphi %s1359_s30, %s1840_s30   ;;  %s1274_s29 = sphi %s1357_s29, %s1831_s29   ;;  %s1270_s28 = sphi %s1355_s28, %s1839_s28   ;;  %s1266_s27 = sphi %s1353_s27, %s1838_s27   ;;  %s1262_s26 = sphi %s1351_s26, %s1837_s26   ;;  %s1258_s25 = sphi %s1349_s25, %s1836_s25   ;;  %s1254_s24 = sphi %s1347_s24, %s1835_s24  }
  0x13   : > { %1796 = sst [smem:[#allocation14_spill]] %s1282_s8  ;;  %p78_p1 = scmp.ne.s32.totalorder %s1262_s26, %s1258_s25 }
  0x14   : > { %1797 = sst [smem:[#allocation15_spill]] %s1290_s10  ;;  %p1778_p2 = scmp.lt.s32.totalorder %s1294_s11, 4 }
  0x15   : > { %s276_s13 = sand.u32 1, %s1294_s11   ;;  %p80_p3 = por %p78_p1, %p53_p0 }
  0x16   : > { %s278_s14 = sand.u32 1, %s1262_s26   ;;  %s785_s15 = sshll.u32 %s1286_s9, 7 }
  0x17   : > { %s1412_s16 = sshll.u32 %s278_s14, 7  ;;  %s1798_s1 = sld [smem:[#allocation20_spill]] }
  0x18   : > { %p1421_p4 = pnand %p1778_p2, %p80_p3  ;;  %s280_s21 = scalar_lea.vmem [#allocation6], %s1412_s16 }
  0x19   : > { %s286_s22 = sshll.u32 %s280_s21, 4  ;;  %s1428_s23 = scalar_lea.sflag [#allocation7], %s276_s13  ;;  %s1426_s22 = int_to_ptr.vmem [resolvable:$true] %s286_s22 }
  0x1a   : > { %p1782_p6 = pneg %p1421_p4 }
  0x1d   : > { %s1417_s19 = scalar_lea.hbm %s1798_s1, %s785_s15  ;;  %s1083_s18 = scalar_lea.hbm %s1798_s1, 4096 }
  0x1e   : > { %s1078_s14 = scalar_lea.hbm %s1417_s19, 2048  ;;  %p1084_p9 = scmp.lt.u32.totalorder %s1417_s19, %s1798_s1 }
  0x1f   : > { %p1079_p5 = scmp.ne.s32.totalorder %s1417_s19, %s1078_s14  ;;  %p1085_p10 = scmp.lt.u32.totalorder %s1083_s18, %s1078_s14 }
  0x20   : > { %p1087_p12 = scmp.lt.u32.totalorder %s1078_s14, %s1417_s19 }
  0x21   : > { %p1081_p7 = pnand %p1782_p6, %p1079_p5  ;;  %p1086_p11 = por %p1085_p10, %p1084_p9 }
  0x23   : > { %p1082_p8 = pneg %p1081_p7  ;;  %p1088_p13 = por %p1087_p12, %p1086_p11 }
  0x25   : > { %p1089_p1 = pnand %p1088_p13, %p1082_p8 }
  0x27   : > { %1092 = shalt.err (!%p1089_p1)
}
  0x28   : > { %s1093_s13 = scalar_lea.vmem %s1426_s22, 2048  ;;  %s1296_s21 = smov [#allocation6]  }
  0x29   : > { %p1094_p3 = scmp.ne.s32.totalorder %s1426_s22, %s1093_s13  ;;  %s1098_s15 = sshll.u32 %s1296_s21, 4  ;;  %s1099_s15 = int_to_ptr.vmem [resolvable:$false] %s1098_s15 }
  0x2a   : > { %s1100_s7 = scalar_lea.vmem %s1099_s15, 4096  ;;  %p1101_p2 = scmp.lt.s32.totalorder %s1426_s22, %s1099_s15 }
  0x2b   : > { %p1096_p5 = pnand %p1094_p3, %p1782_p6  ;;  %p1102_p9 = scmp.lt.s32.totalorder %s1100_s7, %s1093_s13 }
  0x2d   : > { %p1097_p7 = pneg %p1096_p5  ;;  %p1103_p10 = por %p1102_p9, %p1101_p2 }
  0x2f   : > { %p1104_p11 = pnand %p1103_p10, %p1097_p7 }
  0x31   : > { %1107 = shalt.err (!%p1104_p11)
}
  0x32   : > { %s1297_s12 = smov 256   ;;  %s1779_s14 = smov 128  }
  0x33   : > { %s1780_s17 = smov 8   ;;  %p789_p2 = scmp.ge.s32.totalorder %s1294_s11, 1 }
  0x34   : > { %971 = dma.hbm_to_vmem [thread:$0]  (!%p1421_p4), %s1417_s19, 2048, %s1426_s22, %s1428_s23, %s1297_s12, %s1779_s14, %s1780_s17  }
  0x35   : > { %p321_p8 = scmp.lt.s32.totalorder %s1294_s11, 5  ;;  %s1465_s13 = sadd.s32 4294967295, %s1294_s11  }
  0x36   : > { %s779_s21 = sadd.s32 4294967294, %s1294_s11   ;;  %s35_s15 = sadd.s32 1, %s1286_s9 }
  0x37   : > { %p1460_p12 = pnand %p789_p2, %p321_p8  ;;  %p36_p13 = scmp.ge.s32.totalorder %s35_s15, 2 }
  0x38   : > { %s38_s7 = sadd.s32 1, %s1290_s10  ;;  %s45_s19 = sadd.s32 1, %s1274_s29 }
  0x39   : > { %s1800_s18 = scalar_select %p1460_p12, 1, 0 }
  0x3a   : > { %p52_p1 = scmp.ne.s32.totalorder %s1274_s29, %s1270_s28  ;;  %s1843_s15 = smov (%p36_p13, %s35_s15), 0 }
  0x3b   : > { %1801 = sst [smem:[#allocation16_spill]] %s1843_s15  ;;  %s1845_s7 = smov (!%p36_p13, %s38_s7), %s1290_s10 }
  0x3c   : > { %p1481_p3 = por %p53_p0, %p52_p1  ;;  %p58_p5 = scmp.ne.s32.totalorder %s1270_s28, %s1266_s27 }
  0x3d   : > { %p40_p7 = scmp.ge.s32.totalorder %s1845_s7, 2  ;;  %p59_p9 = scmp.eq.s32.totalorder %s1465_s13, 0 }
  0x3e   : > { %s68_s12 = ssub.s32 %s1286_s9, %s1843_s15  ;;  %p84_p10 = scmp.ne.s32.totalorder %s1258_s25, %s1254_s24 }
  0x3f   : > { %s1847_s7 = smov (%p40_p7, %s1845_s7), 0  ;;  %p1497_p11 = por %p59_p9, %p58_p5 }
  0x40   : > { %1803 = sst [smem:[#allocation17_spill]] %s1847_s7  ;;  %p69_p0 = scmp.eq.s32.totalorder %s68_s12, 0 }
  0x41   : > { %s1804_s14 = scalar_select %p1497_p11, 1, 0 }
  0x42   : > { %s42_s17 = ssub.s32 %s1290_s10, %s1847_s7  ;;  %p1503_p2 = por %p84_p10, %p59_p9 }
  0x43   : > { %p43_p8 = scmp.eq.s32.totalorder %s42_s17, 0  ;;  %p223_p13 = scmp.eq.s32.totalorder %s1465_s13, 3 }
  0x44   : > { %s1805_s1 = scalar_select %p1503_p2, 1, 0 }
  0x45   : > { %s1806_s15 = sadd.s32 1, %s1262_s26  ;;  %p1519_p7 = por %p223_p13, %p52_p1 }
  0x46   : > { %s1511_s24 = scalar_select %p69_p0, %s1262_s26, %s1806_s15  }
  0x47   : > { %s1514_s8 = scalar_select %p43_p8, %s1274_s29, %s45_s19  }
  0x48   : > { %1807 = sst [smem:[#allocation18_spill]] %s1511_s24  ;;  %p229_p6 = scmp.eq.s32.totalorder %s779_s21, 3 }
  0x49   : > { %1808 = sst [smem:[#allocation19_spill]] %s1514_s8  ;;  %s258_s5 = sand.u32 1, %s1274_s29  }
  0x4a   : > { %s1809_s6 = scalar_select %p1519_p7, 1, 0 }
  0x4b   : > { %s783_s12 = sshll.u32 %s1290_s10, 7  ;;  %p1528_p9 = por %p229_p6, %p58_p5 }
  0x4c   : > { %s782_s17 = sshll.u32 %s258_s5, 3  ;;  %s1535_s15 = scalar_lea.hbm %s1769_s0, %s783_s12 }
  0x4d   : > { %s1810_s7 = scalar_select %p1528_p9, 1, 0 }
  0x4e   : > { %p1811_p10 = scmp.lt.s32.totalorder %s1294_s11, 4  ;;  %s262_s19 = scalar_lea.vmem [#allocation3], %s782_s17 }
  0x4f   : > { %s269_s10 = sshll.u32 %s262_s19, 4  ;;  %s259_s8 = scalar_lea.sflag [#allocation4], %s258_s5  ;;  %s1545_s10 = int_to_ptr.vmem [resolvable:$true] %s269_s10 }
  0x50   : > { %p1541_p1 = pnand %p1811_p10, %p1481_p3  ;;  %s1108_s2 = scalar_lea.hbm %s1535_s15, 128 }
  0x51   : > { %p1109_p6 = scmp.ne.s32.totalorder %s1535_s15, %s1108_s2  ;;  %s1113_s12 = scalar_lea.hbm %s1769_s0, 256 }
  0x52   : > { %p1110_p5 = pneg %p1541_p1  ;;  %p1114_p3 = scmp.lt.u32.totalorder %s1535_s15, %s1769_s0 }
  0x53   : > { %p1115_p13 = scmp.lt.u32.totalorder %s1113_s12, %s1108_s2  ;;  %p1117_p9 = scmp.lt.u32.totalorder %s1108_s2, %s1535_s15 }
  0x54   : > { %p1111_p0 = pnand %p1110_p5, %p1109_p6 }
  0x55   : > { %p1116_p10 = por %p1115_p13, %p1114_p3 }
  0x56   : > { %p1112_p8 = pneg %p1111_p0 }
  0x57   : > { %p1118_p7 = por %p1117_p9, %p1116_p10 }
  0x59   : > { %p1119_p2 = pnand %p1118_p7, %p1112_p8 }
  0x5b   : > { %1122 = shalt.err (!%p1119_p2)
}
  0x5c   : > { %s1123_s5 = scalar_lea.vmem %s1545_s10, 128  ;;  %s1300_s17 = smov [#allocation3]  }
  0x5d   : > { %p1124_p6 = scmp.ne.s32.totalorder %s1545_s10, %s1123_s5  ;;  %s1128_s19 = sshll.u32 %s1300_s17, 4  ;;  %s1129_s19 = int_to_ptr.vmem [resolvable:$false] %s1128_s19 }
  0x5e   : > { %s1130_s29 = scalar_lea.vmem %s1129_s19, 256  ;;  %p1131_p12 = scmp.lt.s32.totalorder %s1545_s10, %s1129_s19 }
  0x5f   : > { %p1126_p0 = pnand %p1124_p6, %p1110_p5  ;;  %p1132_p3 = scmp.lt.s32.totalorder %s1130_s29, %s1123_s5 }
  0x61   : > { %p1127_p11 = pneg %p1126_p0  ;;  %p1133_p13 = por %p1132_p3, %p1131_p12 }
  0x63   : > { %p1134_p9 = pnand %p1133_p13, %p1127_p11 }
  0x65   : > { %1137 = shalt.err (!%p1134_p9)
}
  0x66   : > { %968 = dma.hbm_to_vmem [thread:$0]  (!%p1541_p1), %s1535_s15, 128, %s1545_s10, %s259_s8  }
  0x67   : > { %s804_s24 = sshll.u32 %s1286_s9, 11  ;;  %s306_s2 = scalar_lea.vmem [#allocation8], %s1412_s16 }
  0x68   : > { %s313_s4 = sshll.u32 %s306_s2, 4  ;;  %s1577_s17 = scalar_lea.hbm %s1772_s3, %s804_s24  ;;  %s1579_s4 = int_to_ptr.vmem [resolvable:$true] %s313_s4 }
  0x69   : > { %s1138_s21 = scalar_lea.hbm %s1577_s17, 2048  ;;  %p1813_p11 = pneg %p1421_p4 }
  0x6a   : > { %p1139_p12 = scmp.ne.s32.totalorder %s1577_s17, %s1138_s21  ;;  %s1143_s16 = scalar_lea.hbm %s1772_s3, 4096 }
  0x6b   : > { %p1144_p1 = scmp.lt.u32.totalorder %s1577_s17, %s1772_s3  ;;  %p1145_p5 = scmp.lt.u32.totalorder %s1143_s16, %s1138_s21 }
  0x6c   : > { %p1141_p2 = pnand %p1139_p12, %p1813_p11  ;;  %p1147_p10 = scmp.lt.u32.totalorder %s1138_s21, %s1577_s17 }
  0x6d   : > { %p1146_p8 = por %p1145_p5, %p1144_p1 }
  0x6e   : > { %p1142_p7 = pneg %p1141_p2 }
  0x6f   : > { %p1148_p6 = por %p1147_p10, %p1146_p8 }
  0x71   : > { %p1149_p0 = pnand %p1148_p6, %p1142_p7 }
  0x73   : > { %1152 = shalt.err (!%p1149_p0)
}
  0x74   : > { %s1153_s19 = scalar_lea.vmem %s1579_s4, 2048  ;;  %p1814_p13 = pmov %p1813_p11 }
  0x75   : > { %p1154_p3 = scmp.ne.s32.totalorder %s1579_s4, %s1153_s19  ;;  %s1301_s29 = smov [#allocation8]  }
  0x76   : > { %s1158_s24 = sshll.u32 %s1301_s29, 4  ;;  %s1159_s24 = int_to_ptr.vmem [resolvable:$false] %s1158_s24 }
  0x77   : > { %p1156_p9 = pnand %p1154_p3, %p1814_p13  ;;  %s1160_s2 = scalar_lea.vmem %s1159_s24, 4096 }
  0x78   : > { %p1161_p11 = scmp.lt.s32.totalorder %s1579_s4, %s1159_s24  ;;  %p1162_p2 = scmp.lt.s32.totalorder %s1160_s2, %s1153_s19 }
  0x79   : > { %p1157_p12 = pneg %p1156_p9 }
  0x7a   : > { %p1163_p1 = por %p1162_p2, %p1161_p11 }
  0x7c   : > { %p1164_p5 = pnand %p1163_p1, %p1157_p12 }
  0x7e   : > { %1167 = shalt.err (!%p1164_p5)
}
  0x7f   : > { %s1815_s22 = smov 8   ;;  %s1816_s12 = smov 128  }
  0x80   : > { %974 = dma.hbm_to_vmem [thread:$0]  (!%p1421_p4), %s1577_s17, 2048, %s1579_s4, %s1428_s23, %s1816_s12, %s1816_s12, %s1815_s22  }
  0x81   : > { %p1817_p7 = scmp.ne.s32.totalorder %s1800_s18, 0 }
  0x82   : > { %s1611_s21 = sand.u32 (!%p1817_p7), 1, %s1270_s28   ;;  %p1818_p8 = scmp.ne.s32.totalorder (!%p1817_p7), %s1804_s14, 0 }
  0x83   : > { %325 = sbr.rel (%p1817_p7) target bundleno = 831 (0x33f), region = 48  ;;  %s790_s8 = sshll.u32 (!%p1817_p7), %s1611_s21, 3 }
  0x84   : > { %s328_s10 = scalar_lea.sflag (!%p1817_p7), [#allocation4], %s1611_s21  ;;  %s1615_s16 = scalar_lea.vmem (!%p1817_p7), [#allocation3], %s790_s8 }
  0x8a   : > { %1241 = dma.done.wait (%p1818_p8), %s328_s10, 128  }
  0x8b   : > { %1243 = vsyncadd (%p1818_p8), %s328_s10, 4294967168  ;;  %s336_s20 = sand.u32 1, %s1465_s13   ;;  %s338_s23 = sand.u32 1, %s1258_s25  }
  0x8c   : > { %s791_s18 = sshll.u32 %s338_s23, 7  ;;  %s337_s4 = scalar_lea.sflag [#allocation7], %s336_s20 }
  0x8d   : > { %s1623_s17 = scalar_lea.vmem [#allocation6], %s791_s18  ;;  %p1819_p4 = scmp.ne.s32.totalorder %s1805_s1, 0 }
  0x8f   : > { %1245 = dma.done.wait (%p1819_p4), %s337_s4, 4096  }
  0x90   : > { %1247 = vsyncadd (%p1819_p4), %s337_s4, 4294963200  ;;  %p393_p10 = scmp.lt.s32.totalorder %s1278_s30, 1  ;;  %s1820_s19 = sld [smem:[#allocation21_spill]] }
  0x91   : > { %s1637_s29 = scalar_lea.vmem [#allocation8], %s791_s18  ;;  %s1639_s24 = scalar_lea.vmem [#allocation9], %s790_s8 }
  0x92   : > { %s1631_s15 = scalar_select %p393_p10, %s1278_s30, 1 }
  0x93   : > { %p794_p6 = scmp.ne.s32.totalorder %s1278_s30, 0 }
  0x94   : > { %v1302_v0 = vmov (!%p794_p6), 0.0  }
  0x95   : > { %400 = sbr.rel (%p794_p6) target bundleno = 156 (0x9c), region = 64  ;;  %401 = vst [vmem:[#allocation2] sm:$0xff] (!%p794_p6), %v1302_v0 }
  0x96   : > { %s395_s13 = scalar_lea.vmem %s1820_s19, %s1631_s15 }
  0x9c PF: > { %v403_v1 = vld [vmem:[%s1623_s17] sm:$0xff]  ;;  %v404_v2 = vld [vmem:[%s1623_s17 + $0x8] sm:$0xff]  ;;  %v405_v3 = vld [vmem:[%s1623_s17 + $0x10] sm:$0xff]  ;;  %v1303_v4 = vmov 0.0|0.0   ;;  %vm1304_vm0 = vmmov 0   ;;  %v1305_v7 = vmov 0.0  }
  0x9d   : > { %909 = vmatprep.subr.bf16.mxu0 %v1303_v4  ;;  %v910_v5 = vpack.c.bf16 %v404_v2, %v403_v1  ;;  %v406_v6 = vld [vmem:[%s1623_s17 + $0x18] sm:$0xff]  ;;  %871 = vmatprep.mubr.msk.f32.mxu0 %vm1304_vm0, %v1305_v7  ;;  %v407_v9 = vld [vmem:[%s1623_s17 + $0x20] sm:$0xff]  ;;  %v408_v10 = vld [vmem:[%s1623_s17 + $0x28] sm:$0xff]  ;;  %p796_p0 = scmp.ne.s32.totalorder %s1278_s30, 1 }
  0x9e   : > { %933 = vmatprep.subr.bf16.mxu1 %v1303_v4  ;;  %906 = vmatprep.mubr.msk.f32.mxu1 %vm1304_vm0, %v1305_v7  ;;  %v913_v8 = vpack.c.bf16 %v406_v6, %v405_v3  ;;  %v498_v11 = vld [vmem:[%s1637_s29] sm:$0xff]  ;;  %v499_v12 = vld [vmem:[%s1637_s29 + $0x8] sm:$0xff]  ;;  %v500_v13 = vld [vmem:[%s1637_s29 + $0x10] sm:$0xff]  ;;  %v916_v15 = vpack.c.bf16 %v408_v10, %v407_v9  ;;  %s1822_s10 = sld [smem:[#allocation22_spill]] (!%p796_p0)  ;;  %s1823_s20 = sld [smem:[#allocation23_spill]] (!%p796_p0) }
  0x9f   : > { %911 = vmatpush3.bf16.msra.mxu0 %v910_v5  ;;  %v501_v14 = vld [vmem:[%s1637_s29 + $0x18] sm:$0xff]  ;;  %v934_v16 = vpack.c.bf16 %v499_v12, %v498_v11  ;;  %v409_v17 = vld [vmem:[%s1623_s17 + $0x30] sm:$0xff]  ;;  %v502_v20 = vld [vmem:[%s1637_s29 + $0x20] sm:$0xff]  ;;  %s1824_s4 = sld [smem:[#allocation24_spill]] (!%p796_p0) }
  0xa0   : > { %912 = vmatprep.subr.bf16.mxu0 %v1303_v4  ;;  %v410_v18 = vld [vmem:[%s1623_s17 + $0x38] sm:$0xff]  ;;  %v937_v19 = vpack.c.bf16 %v501_v14, %v500_v13  ;;  %v503_v21 = vld [vmem:[%s1637_s29 + $0x28] sm:$0xff]  ;;  %v411_v23 = vld [vmem:[%s1623_s17 + $0x40] sm:$0xff] }
  0xa1   : > { %935 = vmatpush3.bf16.msra.mxu1 %v934_v16  ;;  %v919_v22 = vpack.c.bf16 %v410_v18, %v409_v17  ;;  %v412_v24 = vld [vmem:[%s1623_s17 + $0x48] sm:$0xff]  ;;  %v940_v25 = vpack.c.bf16 %v503_v21, %v502_v20  ;;  %v504_v26 = vld [vmem:[%s1637_s29 + $0x30] sm:$0xff]  ;;  %v505_v27 = vld [vmem:[%s1637_s29 + $0x38] sm:$0xff] }
  0xa2   : > { %936 = vmatprep.subr.bf16.mxu1 %v1303_v4  ;;  %v922_v28 = vpack.c.bf16 %v412_v24, %v411_v23  ;;  %v413_v29 = vld [vmem:[%s1623_s17 + $0x50] sm:$0xff]  ;;  %v414_v30 = vld [vmem:[%s1623_s17 + $0x58] sm:$0xff]  ;;  %v943_v31 = vpack.c.bf16 %v505_v27, %v504_v26  ;;  %v506_v32 = vld [vmem:[%s1637_s29 + $0x40] sm:$0xff] }
  0xa3   : > { %914 = vmatpush3.bf16.msra.mxu0 %v913_v8  ;;  %v507_v33 = vld [vmem:[%s1637_s29 + $0x48] sm:$0xff]  ;;  %v925_v34 = vpack.c.bf16 %v414_v30, %v413_v29  ;;  %v415_v35 = vld [vmem:[%s1623_s17 + $0x60] sm:$0xff]  ;;  %v508_v38 = vld [vmem:[%s1637_s29 + $0x50] sm:$0xff] }
  0xa4   : > { %915 = vmatprep.subr.bf16.mxu0 %v1303_v4  ;;  %v416_v36 = vld [vmem:[%s1623_s17 + $0x68] sm:$0xff]  ;;  %v946_v37 = vpack.c.bf16 %v507_v33, %v506_v32  ;;  %v509_v39 = vld [vmem:[%s1637_s29 + $0x58] sm:$0xff]  ;;  %v417_v41 = vld [vmem:[%s1623_s17 + $0x70] sm:$0xff] }
  0xa5   : > { %938 = vmatpush3.bf16.msra.mxu1 %v937_v19  ;;  %v928_v40 = vpack.c.bf16 %v416_v36, %v415_v35  ;;  %v418_v42 = vld [vmem:[%s1623_s17 + $0x78] sm:$0xff]  ;;  %v949_v43 = vpack.c.bf16 %v509_v39, %v508_v38  ;;  %v510_v44 = vld [vmem:[%s1637_s29 + $0x60] sm:$0xff]  ;;  %v511_v45 = vld [vmem:[%s1637_s29 + $0x68] sm:$0xff] }
  0xa6   : > { %939 = vmatprep.subr.bf16.mxu1 %v1303_v4  ;;  %v931_v46 = vpack.c.bf16 %v418_v42, %v417_v41  ;;  %v952_v47 = vpack.c.bf16 %v511_v45, %v510_v44  ;;  %v402_v48 = vld [vmem:[%s1615_s16] sm:$0xff]  ;;  %v795_v52 = vld [vmem:[%s395_s13] ss:$0 sm:$0xff] }
  0xa7   : > { %917 = vmatpush3.bf16.msra.mxu0 %v916_v15  ;;  %v512_v49 = vld [vmem:[%s1637_s29 + $0x70] sm:$0xff]  ;;  %v513_v50 = vld [vmem:[%s1637_s29 + $0x78] sm:$0xff]  ;;  %v497_v57 = vld [vmem:[#allocation2] sm:$0xff] }
  0xa8   : > { %918 = vmatprep.subr.bf16.mxu0 %v1303_v4  ;;  %v955_v51 = vpack.c.bf16 %v513_v50, %v512_v49  ;;  %v797_v62 = vld [vmem:[%s1822_s10] ss:$0 sm:$0xff] (!%p796_p0) }
  0xa9   : > { %941 = vmatpush3.bf16.msra.mxu1 %v940_v25  ;;  %v798_v12 = vld [vmem:[%s1823_s20] ss:$0 sm:$0xff] (!%p796_p0) }
  0xaa   : > { %942 = vmatprep.subr.bf16.mxu1 %v1303_v4  ;;  %v799_v14 = vld [vmem:[%s1824_s4] ss:$0 sm:$0xff] (!%p796_p0) }
  0xab   : > { %920 = vmatpush3.bf16.msra.mxu0 %v919_v22 }
  0xac   : > { %921 = vmatprep.subr.bf16.mxu0 %v1303_v4 }
  0xad   : > { %944 = vmatpush3.bf16.msra.mxu1 %v943_v31 }
  0xae   : > { %945 = vmatprep.subr.bf16.mxu1 %v1303_v4 }
  0xaf   : > { %923 = vmatpush3.bf16.msra.mxu0 %v922_v28 }
  0xb0   : > { %924 = vmatprep.subr.bf16.mxu0 %v1303_v4 }
  0xb1   : > { %947 = vmatpush3.bf16.msra.mxu1 %v946_v37 }
  0xb2   : > { %948 = vmatprep.subr.bf16.mxu1 %v1303_v4 }
  0xb3   : > { %926 = vmatpush3.bf16.msra.mxu0 %v925_v34 }
  0xb4   : > { %927 = vmatprep.subr.bf16.mxu0 %v1303_v4 }
  0xb5   : > { %950 = vmatpush3.bf16.msra.mxu1 %v949_v43 }
  0xb6   : > { %951 = vmatprep.subr.bf16.mxu1 %v1303_v4 }
  0xb7   : > { %929 = vmatpush3.bf16.msra.mxu0 %v928_v40 }
  0xb8   : > { %930 = vmatprep.subr.bf16.mxu0 %v1303_v4 }
  0xb9   : > { %953 = vmatpush3.bf16.msra.mxu1 %v952_v47 }
  0xba   : > { %954 = vmatprep.subr.bf16.mxu1 %v1303_v4 }
  0xbb   : > { %932 = vmatpush3.bf16.msra.mxu0 %v931_v46 }
  0xbd   : > { %956 = vmatpush3.bf16.msra.mxu1 %v955_v51 }
  0xbe   : > { %872 = vmatmul.mubr.f32.vlgmr.msra.gmra.mrb[0].mxu0 %v402_v48 }
 0x191   : > { %v492_v53 = vpop.f32.mrb[0].mxu0 }
 0x192   : > { %v493_v54 = vadd.f32 %v795_v52, %v492_v53  ;;  %v873_v55 = vpop.f32.mrb[1].mxu0 }
 0x194   : > { %v496_v56 = vmax.f32 %v493_v54, 0.0 }
 0x196   : > { %907 = vmatmul.mubr.f32.vlgmr.msra.gmra.mrb[0].mxu1 %v496_v56 }
 0x266   : > { %589 = sbr.rel (%p796_p0) target bundleno = 804 (0x324), region = 68 }
 0x269   : > { %v580_v58 = vpop.f32.mrb[0].mxu1 }
 0x26a   : > { %v584_v59 = vadd.f32 %v580_v58, %v497_v57  ;;  %v908_v60 = vpop.f32.mrb[1].mxu1 }
 0x26c   : > { %585 = vst [vmem:[#allocation2] sm:$0xff] %v584_v59 }
 0x273   : > { %v590_v61 = vld [vmem:[#allocation2] sm:$0xff] }
 0x274   : > { %v591_v63 = vadd.f32 %v590_v61, %v402_v48 }
 0x276   : > { %v599_v0 = vadd.f32 %v797_v62, %v591_v63 }
 0x278   : > { %600 = vadd.xlane.f32.xlu0 %v599_v0  ;;  %v602_v1 = vmul.f32 %v599_v0, %v599_v0 }
 0x27c   : > { %603 = vadd.xlane.f32.xlu0 %v602_v1 }
 0x305   : > { %v601_v2 = vpop.xlane.xlu0 %600 }
 0x306   : > { %v605_v3 = vmul.f32 0.0078125, %v601_v2 }
 0x308   : > { %v607_v5 = vmul.f32 %v605_v3, %v605_v3  ;;  %v610_v10 = vsub.f32 %v599_v0, %v605_v3 }
 0x309   : > { %v604_v4 = vpop.xlane.xlu0 %603 }
 0x30a   : > { %v606_v6 = vmul.f32 0.0078125, %v604_v4 }
 0x30c   : > { %v608_v7 = vsub.f32 %v606_v6, %v607_v5 }
 0x30e   : > { %v609_v8 = vmax.f32 %v608_v7, 0.0 }
 0x310   : > { %v611_v9 = vadd.f32 1e-06, %v609_v8 }
 0x312   : > { %1076 = vrsqrt.f32 %v611_v9 }
 0x31c   : > { %v1077_v11 = vpop.eup %1076 }
 0x31d   : > { %v613_v13 = vmul.f32 %v1077_v11, %v610_v10 }
 0x31f   : > { %v621_v15 = vmul.f32 %v798_v12, %v613_v13 }
 0x321   : > { %v629_v16 = vadd.f32 %v799_v14, %v621_v15 }
 0x323   : > { %630 = vst [vmem:[%s1639_s24] sm:$0xff] %v629_v16 }
 0x324 PF: > { %s1825_s17 = sld [smem:[#allocation14_spill]]  ;;  %s1826_s19 = sld [smem:[#allocation25_spill]] }
 0x325   : > { %s645_s29 = sshll.u32 %s1639_s24, 4  ;;  %s632_s1 = scalar_lea.sflag [#allocation5], %s1611_s21  ;;  %s646_s29 = int_to_ptr.vmem [resolvable:$true] %s645_s29 }
 0x326   : > { %s1168_s2 = scalar_lea.vmem %s646_s29, 128  ;;  %p1827_p13 = scmp.ne.s32.totalorder %s1809_s6, 0 }
 0x327   : > { %p1169_p3 = scmp.ne.s32.totalorder %s646_s29, %s1168_s2  ;;  %s1306_s22 = smov [#allocation9]  }
 0x328   : > { %s1172_s12 = sshll.u32 %s1306_s22, 4  ;;  %s1173_s12 = int_to_ptr.vmem [resolvable:$false] %s1172_s12 }
 0x329   : > { %p1170_p9 = pnand %p1169_p3, %p1827_p13  ;;  %s1174_s8 = scalar_lea.vmem %s1173_s12, 256 }
 0x32a   : > { %s801_s15 = sshll.u32 %s1825_s17, 7  ;;  %p1175_p11 = scmp.lt.s32.totalorder %s646_s29, %s1173_s12 }
 0x32b   : > { %s1711_s13 = scalar_lea.hbm %s1826_s19, %s801_s15  ;;  %p1171_p12 = pneg %p1170_p9 }
 0x32c   : > { %p1176_p2 = scmp.lt.s32.totalorder %s1174_s8, %s1168_s2 }
 0x32e   : > { %p1177_p1 = por %p1176_p2, %p1175_p11 }
 0x330   : > { %p1178_p5 = pnand %p1177_p1, %p1171_p12 }
 0x332   : > { %1181 = shalt.err (!%p1178_p5)
}
 0x333   : > { %s1182_s21 = scalar_lea.hbm %s1711_s13, 128  ;;  %s1186_s30 = scalar_lea.hbm %s1826_s19, 256 }
 0x334   : > { %p1183_p7 = scmp.ne.s32.totalorder %s1711_s13, %s1182_s21  ;;  %p1187_p10 = scmp.lt.u32.totalorder %s1711_s13, %s1826_s19 }
 0x335   : > { %p1188_p6 = scmp.lt.u32.totalorder %s1186_s30, %s1182_s21  ;;  %p1190_p3 = scmp.lt.u32.totalorder %s1182_s21, %s1711_s13 }
 0x336   : > { %p1184_p8 = pnand %p1183_p7, %p1827_p13 }
 0x337   : > { %p1189_p0 = por %p1188_p6, %p1187_p10 }
 0x338   : > { %p1185_p4 = pneg %p1184_p8 }
 0x339   : > { %p1191_p9 = por %p1190_p3, %p1189_p0 }
 0x33b   : > { %p1192_p12 = pnand %p1191_p9, %p1185_p4 }
 0x33d   : > { %1195 = shalt.err (!%p1192_p12)
}
 0x33e   : > { %963 = dma.vmem_to_hbm [thread:$0]  (%p1827_p13), %s646_s29, 128, %s1711_s13, %s632_s1  }
 0x33f PF: > { %p980_p11 = scmp.ge.s32.totalorder %s1294_s11, 2  ;;  %s657_s23 = sand.u32 1, %s1266_s27  }
 0x340   : > { %p1828_p2 = scmp.ne.s32.totalorder %s1810_s7, 0  ;;  %s658_s18 = scalar_lea.sflag [#allocation5], %s657_s23 }
 0x342   : > { %p976_p1 = pnand %p980_p11, %p1828_p2 }
 0x344   : > { %1249 = dma.done.wait (!%p976_p1), %s658_s18, 128  }
 0x345   : > { %1251 = vsyncadd (!%p976_p1), %s658_s18, 4294967168  ;;  %s26_s11 = sadd.s32 1, %s1294_s11   ;;  %s1829_s4 = sld [smem:[#allocation18_spill]] }
 0x346   : > { %p23_p5 = scmp.ge.s32.totalorder %s26_s11, 6   ;;  %s1830_s6 = sld [smem:[#allocation13_spill]] }
 0x347   : > { %s1831_s29 = sld [smem:[#allocation19_spill]]  ;;  %s1832_s8 = sld [smem:[#allocation15_spill]] }
 0x348   : > { %s1833_s17 = sld [smem:[#allocation16_spill]]  ;;  %s1834_s10 = sld [smem:[#allocation17_spill]] }
 0x349   : > { %s1835_s24 = smov %s1258_s25  ;;  %s1836_s25 = smov %s1262_s26 }
 0x34a   : > { %s1838_s27 = smov %s1270_s28  ;;  %s1840_s30 = smov %s1286_s9 }
 0x34b   : > { %s1837_s26 = smov %s1829_s4  ;;  %25 = sbr.rel (!%p23_p5) target bundleno = 18 (0x12), region = 128 }
 0x34c   : > { %s1839_s28 = smov %s1830_s6 }
 0x34e   : > { %s1841_s9 = smov %s1833_s17 }
 0x352   :  { %663 = vsyncpa [#allocation4], 1 }
 0x353   :  { %665 = vsyncpa [#allocation4 + $0x1], 1 }
 0x354   :  { %666 = vsyncpa [#allocation7], 1 }
 0x355   :  { %668 = vsyncpa [#allocation7 + $0x1], 1 }
 0x356   :  { %669 = vsyncpa [#allocation5], 1 }
 0x357   :  { %671 = vsyncpa [#allocation5 + $0x1], 1 }

</bundles_post_ra>
